<compile_context>
chip_gen: v6e
topology: v6e:2x2x1
jax: 0.10.0
libtpu: 0.0.40
codegen_flags: <defaults>
</compile_context>

<pallas_src>
import functools

import jax
import jax.numpy as jnp
from jax.experimental import pallas as pl
from jax.experimental.pallas import tpu as pltpu

_EPS = 1e-08
_LANE = 128
_MAX_TILE_ROWS = 1024  # (1024, 128) f32 = 512 KiB per stream per buffer.


def _focal_terms(p, t, alpha, gamma):
    """Elementwise focal loss terms (computed in f32)."""
    p = jnp.clip(p, _EPS, 1.0 - _EPS)
    one_minus_p = 1.0 - p
    if gamma == 2:  # keep the power off the EUP: plain multiplies on the VPU
        pow_p = p * p
        pow_1mp = one_minus_p * one_minus_p
    else:
        pow_p = p ** gamma
        pow_1mp = one_minus_p ** gamma
    loss0 = -alpha * pow_1mp * t * jnp.log(p)
    loss1 = -(1.0 - alpha) * pow_p * (1.0 - t) * jnp.log(one_minus_p)
    return loss0 + loss1


def _focal_sum_kernel(p_ref, t_ref, acc_ref, *, alpha, gamma, n,
                      tile_rows, tiles_per_core):
    """Accumulates masked per-tile partial sums into a per-core (8,128) block."""
    c = pl.program_id(0)   # core split ("parallel")
    i = pl.program_id(1)   # row-tile within this core ("arbitrary")

    @pl.when(i == 0)
    def _():
        acc_ref[...] = jnp.zeros_like(acc_ref)

    p = p_ref[...].astype(jnp.float32)
    t = t_ref[...].astype(jnp.float32)
    loss = _focal_terms(p, t, alpha, gamma)

    # Validity mask from the *logical* element index vs n. This zeroes the
    # lane-pad tail, any out-of-bounds rows of an overhanging last block, and
    # fully-duplicated tiles produced by the clamped index_map below.
    tile_idx = c * tiles_per_core + i
    grow = tile_idx * tile_rows + jax.lax.broadcasted_iota(jnp.int32, loss.shape, 0)
    col = jax.lax.broadcasted_iota(jnp.int32, loss.shape, 1)
    full_rows = n // _LANE
    rem = n % _LANE
    mask = (grow < full_rows) | ((grow == full_rows) & (col < rem))
    loss = jnp.where(mask, loss, 0.0)

    # VPU-only partial reduction: (tile_rows, 128) -> (8, 128). The single
    # expensive cross-lane reduce happens once, in the wrapper, on (cores*8,128).
    acc_ref[...] += loss.reshape(-1, 8, _LANE).sum(axis=0)


def _focal_elem_kernel(p_ref, t_ref, o_ref, *, alpha, gamma):
    p = p_ref[...].astype(jnp.float32)
    t = t_ref[...].astype(jnp.float32)
    o_ref[...] = _focal_terms(p, t, alpha, gamma).astype(o_ref.dtype)


def focal_loss(y_pred, y_target, alpha=0.5, gamma=2, reduction="mean"):
    assert y_pred.shape == y_target.shape
    orig_shape = y_pred.shape
    orig_dtype = y_pred.dtype
    n = int(y_pred.size)
    assert n > 0

    # Lane-dense 2D slab (rows, 128) in the native dtype. Only the last partial
    # 128-lane row is ever padded (<= 127 elements); no full-size copy/mask.
    rows = pl.cdiv(n, _LANE)
    pad = rows * _LANE - n
    p_flat = y_pred.reshape(-1)
    t_flat = y_target.reshape(-1)
    if pad:
        p_flat = jnp.pad(p_flat, (0, pad))
        t_flat = jnp.pad(t_flat, (0, pad))
    p2 = p_flat.reshape(rows, _LANE)
    t2 = t_flat.reshape(rows, _LANE)

    # Large tiles to amortize per-grid-step overhead; multiple of 8 sublanes.
    tile_rows = min(_MAX_TILE_ROWS, ((rows + 7) // 8) * 8)
    row_tiles = pl.cdiv(rows, tile_rows)
    in_bytes = n * (p2.dtype.itemsize + t2.dtype.itemsize)
    alpha = float(alpha)

    if reduction in ("mean", "sum"):
        # Split the row-tile range across (up to) 2 TensorCores; each core gets
        # its own resident (8,128) accumulator block. On 1-TC chips this is
        # just a sequential loop with identical total work.
        num_cores = 2 if row_tiles >= 2 else 1
        tiles_per_core = pl.cdiv(row_tiles, num_cores)

        kernel = functools.partial(
            _focal_sum_kernel, alpha=alpha, gamma=gamma, n=n,
            tile_rows=tile_rows, tiles_per_core=tiles_per_core)

        def in_map(c, i):
            # Clamp so no block starts fully outside the array; any duplicated
            # tile is zeroed by the in-kernel logical-index mask.
            return (jnp.minimum(c * tiles_per_core + i, row_tiles - 1), 0)

        in_spec = pl.BlockSpec((tile_rows, _LANE), in_map)
        out_spec = pl.BlockSpec((8, _LANE), lambda c, i: (c, 0))

        partials = pl.pallas_call(
            kernel,
            out_shape=jax.ShapeDtypeStruct((num_cores * 8, _LANE), jnp.float32),
            grid_spec=pltpu.PrefetchScalarGridSpec(
                num_scalar_prefetch=0,
                grid=(num_cores, tiles_per_core),
                in_specs=[in_spec, in_spec],
                out_specs=out_spec,
            ),
            compiler_params=pltpu.CompilerParams(
                dimension_semantics=("parallel", "arbitrary")),
            cost_estimate=pl.CostEstimate(
                flops=16 * n,
                transcendentals=2 * n,
                bytes_accessed=in_bytes + num_cores * 8 * _LANE * 4),
        )(p2, t2)

        total = jnp.sum(partials)
        if reduction == "mean":
            total = total / jnp.float32(n)
        return total.astype(orig_dtype)

    # reduction == 'none': elementwise output, unpad, restore original shape.
    kernel = functools.partial(_focal_elem_kernel, alpha=alpha, gamma=gamma)
    tile_spec = pl.BlockSpec((tile_rows, _LANE), lambda i: (i, 0))
    out = pl.pallas_call(
        kernel,
        out_shape=jax.ShapeDtypeStruct((rows, _LANE), orig_dtype),
        grid_spec=pltpu.PrefetchScalarGridSpec(
            num_scalar_prefetch=0,
            grid=(row_tiles,),
            in_specs=[tile_spec, tile_spec],
            out_specs=tile_spec,
        ),
        compiler_params=pltpu.CompilerParams(dimension_semantics=("parallel",)),
        cost_estimate=pl.CostEstimate(
            flops=16 * n,
            transcendentals=2 * n,
            bytes_accessed=in_bytes + rows * _LANE * orig_dtype.itemsize),
    )(p2, t2)
    return out.reshape(-1)[:n].reshape(orig_shape)


def _focal_loss_ref(y_pred, y_target, alpha=0.5, gamma=2, reduction="mean"):
    loss = _focal_terms(y_pred.astype(jnp.float32),
                        y_target.astype(jnp.float32), float(alpha), gamma)
    if reduction == "mean":
        return jnp.mean(loss)
    if reduction == "sum":
        return jnp.sum(loss)
    return loss


if __name__ == "__main__":
    key = jax.random.PRNGKey(0)
    k1, k2 = jax.random.split(key)

    # NCHW inputs (probabilities), as the PyTorch module would receive.
    shape = (2, 4, 16, 16)
    y_pred = jax.random.uniform(k1, shape, dtype=jnp.float32)
    y_target = (jax.random.uniform(k2, shape, dtype=jnp.float32) > 0.5).astype(jnp.float32)

    out_mean = jax.block_until_ready(focal_loss(y_pred, y_target, reduction="mean"))
    ref_mean = _focal_loss_ref(y_pred, y_target, reduction="mean")
    assert jnp.allclose(out_mean, ref_mean, rtol=1e-5, atol=1e-6), (out_mean, ref_mean)

    out_sum = jax.block_until_ready(focal_loss(y_pred, y_target, reduction="sum"))
    ref_sum = _focal_loss_ref(y_pred, y_target, reduction="sum")
    assert jnp.allclose(out_sum, ref_sum, rtol=1e-5, atol=1e-5), (out_sum, ref_sum)

    out_none = jax.block_until_ready(focal_loss(y_pred, y_target, reduction="none"))
    ref_none = _focal_loss_ref(y_pred, y_target, reduction="none")
    assert out_none.shape == shape
    assert jnp.allclose(out_none, ref_none, rtol=1e-5, atol=1e-6)

    # Second check: n not a multiple of 128, multiple row tiles, two-core
    # reduction split, clamped/duplicated last tile, in-kernel tail masking.
    shape2 = (2, 4, 183, 183)
    y_pred2 = jax.random.uniform(k1, shape2, dtype=jnp.float32)
    y_target2 = (jax.random.uniform(k2, shape2, dtype=jnp.float32) > 0.5).astype(jnp.float32)
    out2 = jax.block_until_ready(focal_loss(y_pred2, y_target2, reduction="mean"))
    ref2 = _focal_loss_ref(y_pred2, y_target2, reduction="mean")
    assert jnp.allclose(out2, ref2, rtol=1e-5, atol=1e-6), (out2, ref2)

    print("KERNEL_OK")
</pallas_src>

<mosaic_0001>
module attributes {stable_mosaic.version = 11 : i64} {
  func.func @_focal_sum_kernel(%arg0: i32, %arg1: i32, %arg2: memref<16x128xf32, #tpu.memory_space<vmem>>, %arg3: memref<16x128xf32, #tpu.memory_space<vmem>>, %arg4: memref<8x128xf32, #tpu.memory_space<vmem>>) attributes {dimension_semantics = [#tpu.dimension_semantics<parallel>, #tpu.dimension_semantics<arbitrary>], iteration_bounds = array<i64: 1, 1>, scalar_prefetch = 0 : i64, scratch_operands = 0 : i64, tpu.core_type = #tpu.core_type<tc>, window_params = [{transform_indices = @transform_0, window_bounds = array<i64: 16, 128>}, {transform_indices = @transform_1, window_bounds = array<i64: 16, 128>}, {transform_indices = @transform_2, window_bounds = array<i64: 8, 128>}]} {
    %c0_i32 = arith.constant 0 : i32
    %0 = arith.cmpi eq, %arg1, %c0_i32 : i32
    %1 = arith.extui %0 : i1 to i32
    %c0_i32_0 = arith.constant 0 : i32
    %2 = arith.cmpi ne, %1, %c0_i32_0 : i32
    scf.if %2 {
      %cst_18 = arith.constant 0.000000e+00 : f32
      %48 = vector.broadcast %cst_18 : f32 to vector<8x128xf32>
      %c0_19 = arith.constant 0 : index
      %c0_20 = arith.constant 0 : index
      %49 = vector.load %arg4[%c0_19, %c0_20] : memref<8x128xf32, #tpu.memory_space<vmem>>, vector<8x128xf32>
      tpu.vector_store %arg4[%c0_19, %c0_20], %48 {strides = array<i32>} : memref<8x128xf32, #tpu.memory_space<vmem>>, vector<8x128xf32>,
    } else {
    }
    %c0 = arith.constant 0 : index
    %c0_1 = arith.constant 0 : index
    %3 = vector.load %arg2[%c0, %c0_1] : memref<16x128xf32, #tpu.memory_space<vmem>>, vector<16x128xf32>
    %c0_2 = arith.constant 0 : index
    %c0_3 = arith.constant 0 : index
    %4 = vector.load %arg3[%c0_2, %c0_3] : memref<16x128xf32, #tpu.memory_space<vmem>>, vector<16x128xf32>
    %cst = arith.constant 9.99999993E-9 : f32
    %cst_4 = arith.constant 1.000000e+00 : f32
    %5 = vector.broadcast %cst : f32 to vector<16x128xf32>
    %6 = arith.maximumf %5, %3 : vector<16x128xf32>
    %7 = vector.broadcast %cst_4 : f32 to vector<16x128xf32>
    %8 = arith.minimumf %7, %6 : vector<16x128xf32>
    %cst_5 = arith.constant 1.000000e+00 : f32
    %9 = vector.broadcast %cst_5 : f32 to vector<16x128xf32>
    %10 = arith.subf %9, %8 : vector<16x128xf32>
    %11 = arith.mulf %8, %8 : vector<16x128xf32>
    %12 = arith.mulf %10, %10 : vector<16x128xf32>
    %cst_6 = arith.constant -5.000000e-01 : f32
    %13 = vector.broadcast %cst_6 : f32 to vector<16x128xf32>
    %14 = arith.mulf %13, %12 : vector<16x128xf32>
    %15 = arith.mulf %14, %4 : vector<16x128xf32>
    %16 = math.log %8 : vector<16x128xf32>
    %17 = arith.mulf %15, %16 : vector<16x128xf32>
    %cst_7 = arith.constant -5.000000e-01 : f32
    %18 = vector.broadcast %cst_7 : f32 to vector<16x128xf32>
    %19 = arith.mulf %18, %11 : vector<16x128xf32>
    %cst_8 = arith.constant 1.000000e+00 : f32
    %20 = vector.broadcast %cst_8 : f32 to vector<16x128xf32>
    %21 = arith.subf %20, %4 : vector<16x128xf32>
    %22 = arith.mulf %19, %21 : vector<16x128xf32>
    %23 = math.log %10 : vector<16x128xf32>
    %24 = arith.mulf %22, %23 : vector<16x128xf32>
    %25 = arith.addf %17, %24 : vector<16x128xf32>
    %c1_i32 = arith.constant 1 : i32
    %26 = arith.muli %arg0, %c1_i32 : i32
    %27 = arith.addi %26, %arg1 : i32
    %c16_i32 = arith.constant 16 : i32
    %28 = arith.muli %27, %c16_i32 : i32
    %29 = tpu.iota {dimensions = array<i32: 0>} : vector<16x128xi32>
    %30 = vector.broadcast %28 : i32 to vector<16x128xi32>
    %31 = arith.addi %30, %29 : vector<16x128xi32>
    %32 = tpu.iota {dimensions = array<i32: 1>} : vector<16x128xi32>
    %c16_i32_9 = arith.constant 16 : i32
    %33 = vector.broadcast %c16_i32_9 : i32 to vector<16x128xi32>
    %34 = arith.cmpi slt, %31, %33 : vector<16x128xi32>
    %c16_i32_10 = arith.constant 16 : i32
    %35 = vector.broadcast %c16_i32_10 : i32 to vector<16x128xi32>
    %36 = arith.cmpi eq, %31, %35 : vector<16x128xi32>
    %c0_i32_11 = arith.constant 0 : i32
    %37 = vector.broadcast %c0_i32_11 : i32 to vector<16x128xi32>
    %38 = arith.cmpi slt, %32, %37 : vector<16x128xi32>
    %39 = arith.andi %36, %38 : vector<16x128xi1>
    %40 = arith.ori %34, %39 : vector<16x128xi1>
    %cst_12 = arith.constant 0.000000e+00 : f32
    %41 = vector.broadcast %cst_12 : f32 to vector<16x128xf32>
    %42 = arith.select %40, %25, %41 : vector<16x128xi1>, vector<16x128xf32>
    %c0_13 = arith.constant 0 : index
    %c0_14 = arith.constant 0 : index
    %43 = vector.load %arg4[%c0_13, %c0_14] : memref<8x128xf32, #tpu.memory_space<vmem>>, vector<8x128xf32>
    %44 = vector.shape_cast %42 : vector<16x128xf32> to vector<2x8x128xf32>
    %cst_15 = arith.constant dense<0.000000e+00> : vector<8x128xf32>
    %45 = vector.multi_reduction <add>, %44, %cst_15 [0] : vector<2x8x128xf32> to vector<8x128xf32>
    %46 = arith.addf %43, %45 : vector<8x128xf32>
    %c0_16 = arith.constant 0 : index
    %c0_17 = arith.constant 0 : index
    %47 = vector.load %arg4[%c0_16, %c0_17] : memref<8x128xf32, #tpu.memory_space<vmem>>, vector<8x128xf32>
    tpu.vector_store %arg4[%c0_16, %c0_17], %46 {strides = array<i32>} : memref<8x128xf32, #tpu.memory_space<vmem>>, vector<8x128xf32>,
    return
  }
  func.func @transform_0(%arg0: i32, %arg1: i32) -> (i32, i32) {
    %c1_i32 = arith.constant 1 : i32
    %0 = arith.muli %arg0, %c1_i32 : i32
    %1 = arith.addi %0, %arg1 : i32
    %c0_i32 = arith.constant 0 : i32
    %2 = arith.minsi %1, %c0_i32 : i32
    %c0_i32_0 = arith.constant 0 : i32
    %c0_i32_1 = arith.constant 0 : i32
    return %2, %c0_i32_0 : i32, i32
  }
  func.func @transform_1(%arg0: i32, %arg1: i32) -> (i32, i32) {
    %c1_i32 = arith.constant 1 : i32
    %0 = arith.muli %arg0, %c1_i32 : i32
    %1 = arith.addi %0, %arg1 : i32
    %c0_i32 = arith.constant 0 : i32
    %2 = arith.minsi %1, %c0_i32 : i32
    %c0_i32_0 = arith.constant 0 : i32
    %c0_i32_1 = arith.constant 0 : i32
    return %2, %c0_i32_0 : i32, i32
  }
  func.func @transform_2(%arg0: i32, %arg1: i32) -> (i32, i32) {
    %c0_i32 = arith.constant 0 : i32
    %c0_i32_0 = arith.constant 0 : i32
    return %arg0, %c0_i32 : i32, i32
  }
}

</mosaic_0001>

<bundles_post_ra>
// kernel: tpu_custom_call.1
= control target key start
LH: loop header
LB: loop body
LE: loop exit
PB: predicated region body
PF: predicated region fallthrough
CT: control target
= control target key end

     0   :  { %7 = vsyncpa [#allocation3], 0  ;;  %s257_s0 = inlined_call_operand.hbm [shape: f32[16,128], index: 0, kind: input, shape index: {}]   ;;  %s258_s1 = inlined_call_operand.hbm [shape: f32[16,128], index: 1, kind: input, shape index: {}]   ;;  %s259_s2 = inlined_call_operand.hbm [shape: f32[8,128], index: 2, kind: output, shape index: {}]  }
   0x1   :  { %8 = vsyncpa [#allocation6], 0 }
   0x2   :  { %9 = vsyncpa [#allocation4], 0  ;;  %s228_s9 = smov [#allocation2]  }
   0x3   :  { %s21_s10 = sshll.u32 %s228_s9, 4  ;;  %s22_s10 = int_to_ptr.vmem [resolvable:$true] %s21_s10 }
   0x4   :  { %s170_s11 = scalar_lea.vmem %s22_s10, 256  ;;  %p175_p1 = scmp.lt.s32.totalorder %s22_s10, %s22_s10 }
   0x5   :  { %p171_p0 = scmp.ne.s32.totalorder %s22_s10, %s170_s11  ;;  %p176_p2 = scmp.lt.s32.totalorder %s170_s11, %s170_s11 }
   0x7   :  { %p177_p3 = por %p176_p2, %p175_p1 }
   0x9   :  { %p178_p4 = pnand %p177_p3, %p171_p0 }
   0xb   :  { %181 = shalt.err (!%p178_p4)
}
   0xc   :  { %s229_s12 = smov 128   ;;  %s230_s13 = smov 8  }
   0xd   :  { %27 = dma.hbm_to_vmem [thread:$0]  %s257_s0, 256, %s22_s10, [#allocation3], %s229_s12, %s229_s12, %s230_s13  }
   0xe   :  { %s231_s16 = smov [#allocation5]  }
   0xf   :  { %s39_s17 = sshll.u32 %s231_s16, 4  ;;  %s40_s17 = int_to_ptr.vmem [resolvable:$true] %s39_s17 }
  0x10   :  { %s190_s18 = scalar_lea.vmem %s40_s17, 256  ;;  %p195_p6 = scmp.lt.s32.totalorder %s40_s17, %s40_s17 }
  0x11   :  { %p191_p5 = scmp.ne.s32.totalorder %s40_s17, %s190_s18  ;;  %p196_p7 = scmp.lt.s32.totalorder %s190_s18, %s190_s18 }
  0x13   :  { %p197_p8 = por %p196_p7, %p195_p6 }
  0x15   :  { %p198_p9 = pnand %p197_p8, %p191_p5 }
  0x17   :  { %201 = shalt.err (!%p198_p9)
}
  0x18   :  { %45 = dma.hbm_to_vmem [thread:$0]  %s258_s1, 256, %s40_s17, [#allocation6], %s229_s12, %s229_s12, %s230_s13  }
  0x19   :  { %222 = dma.done.wait [#allocation3], 256  }
  0x1a   :  { %223 = vsyncadd [#allocation3], 4294967040 }
  0x1b   :  { %224 = dma.done.wait [#allocation6], 256  }
  0x1c   :  { %225 = vsyncadd [#allocation6], 4294967040  ;;  %v65_v0 = vld [vmem:[#allocation2] sm:$0xff]  ;;  %v66_v1 = vld [vmem:[#allocation2 + $0x8] sm:$0xff]  ;;  %s232_s0 = smov [#allocation7]  }
  0x1d   :  { %v69_v2 = vmax.f32 %v65_v0, 1e-08  ;;  %v70_v3 = vmax.f32 %v66_v1, 1e-08  ;;  %v67_v11 = vld [vmem:[#allocation5] sm:$0xff]  ;;  %v68_v13 = vld [vmem:[#allocation5 + $0x8] sm:$0xff] }
  0x1e   :  { %v91_v17 = vsub.f32 1.0, %v67_v11  ;;  %v92_v19 = vsub.f32 1.0, %v68_v13  ;;  %s134_s1 = sshll.u32 %s232_s0, 4  ;;  %s135_s1 = int_to_ptr.vmem [resolvable:$true] %s134_s1 }
  0x1f   :  { %v71_v4 = vmin.f32 %v69_v2, 1.0  ;;  %v72_v5 = vmin.f32 %v70_v3, 1.0  ;;  %s202_s21 = scalar_lea.vmem %s135_s1, 128  ;;  %p207_p11 = scmp.lt.s32.totalorder %s135_s1, %s135_s1 }
  0x20   :  { %p203_p10 = scmp.ne.s32.totalorder %s135_s1, %s202_s21  ;;  %p208_p12 = scmp.lt.s32.totalorder %s202_s21, %s202_s21 }
  0x21   :  { %v73_v6 = vsub.f32 1.0, %v71_v4  ;;  %v74_v7 = vsub.f32 1.0, %v72_v5  ;;  %154 = vlog2.f32 %v71_v4  ;;  %v75_v10 = vmul.f32 %v71_v4, %v71_v4 }
  0x22   :  { %156 = vlog2.f32 %v72_v5  ;;  %v76_v12 = vmul.f32 %v72_v5, %v72_v5  ;;  %p209_p13 = por %p208_p12, %p207_p11 }
  0x23   :  { %158 = vlog2.f32 %v73_v6  ;;  %v77_v8 = vmul.f32 %v73_v6, %v73_v6  ;;  %v78_v9 = vmul.f32 %v74_v7, %v74_v7  ;;  %v89_v16 = vmul.f32 -0.5, %v75_v10 }
  0x24   :  { %160 = vlog2.f32 %v74_v7  ;;  %v90_v18 = vmul.f32 -0.5, %v76_v12  ;;  %p210_p0 = pnand %p209_p13, %p203_p10 }
  0x25   :  { %v79_v14 = vmul.f32 -0.5, %v77_v8  ;;  %v80_v15 = vmul.f32 -0.5, %v78_v9  ;;  %v93_v25 = vmul.f32 %v91_v17, %v89_v16 }
  0x26   :  { %v94_v28 = vmul.f32 %v92_v19, %v90_v18 }
  0x27   :  { %v81_v20 = vmul.f32 %v79_v14, %v67_v11  ;;  %v82_v22 = vmul.f32 %v80_v15, %v68_v13 }
  0x2e   :  { %v155_v21 = vpop.eup %154 }
  0x2f   :  { %v157_v23 = vpop.eup %156  ;;  %v84_v24 = vmul.f32 0.6931472, %v155_v21 }
  0x30   :  { %v159_v26 = vpop.eup %158  ;;  %v86_v27 = vmul.f32 0.6931472, %v157_v23 }
  0x31   :  { %v161_v29 = vpop.eup %160  ;;  %v87_v30 = vmul.f32 %v84_v24, %v81_v20  ;;  %v96_v31 = vmul.f32 0.6931472, %v159_v26 }
  0x32   :  { %v88_v32 = vmul.f32 %v86_v27, %v82_v22  ;;  %v98_v33 = vmul.f32 0.6931472, %v161_v29 }
  0x33   :  { %v99_v34 = vmul.f32 %v96_v31, %v93_v25 }
  0x34   :  { %v100_v35 = vmul.f32 %v98_v33, %v94_v28 }
  0x35   :  { %v101_v36 = vadd.f32 %v99_v34, %v87_v30 }
  0x36   :  { %v102_v37 = vadd.f32 %v100_v35, %v88_v32 }
  0x38   :  { %v125_v38 = vadd.f32 %v102_v37, %v101_v36 }
  0x3a   :  { %127 = vst [vmem:[#allocation7] sm:$0xff] %v125_v38 }
  0x3b   :  { %213 = shalt.err (!%p210_p0)
}
  0x3c   :  { %137 = dma.vmem_to_hbm [thread:$0]  %s135_s1, 128, %s259_s2, [#allocation4]  }
  0x3d   :  { %226 = dma.done.wait [#allocation4], 128  }
  0x3e   :  { %227 = vsyncadd [#allocation4], 4294967168 }
  0x3f   :  { %141 = vsyncpa [#allocation3], 1 }
  0x40   :  { %142 = vsyncpa [#allocation6], 1 }
  0x41   :  { %143 = vsyncpa [#allocation4], 1 }

</bundles_post_ra>
